<compile_context>
chip_gen: v6e
topology: v6e:2x2x1
jax: 0.10.0
libtpu: 0.0.40
codegen_flags: <defaults>
</compile_context>

<pallas_src>
import functools

import jax
import jax.numpy as jnp
from jax.experimental import pallas as pl
from jax.experimental.pallas import tpu as pltpu


_VMEM_LIMIT_BYTES = 32 * 1024 * 1024    # scoped VMEM limit, safe on v5e/v6e/v7x
_TILE_BUDGET_BYTES = 24 * 1024 * 1024   # budget for pipelined tiles + f32 temps
_MAX_TILE_ROWS = 1024                   # HBM roofline plateaus by ~512-1024 rows


def _layernorm_kernel(x_ref, g_ref, b_ref, o_ref, *, eps):
    # Hoist resident-parameter casts once per tile.
    g = g_ref[...].astype(jnp.float32)              # (1, H)
    b = b_ref[...].astype(jnp.float32)              # (1, H)

    x = x_ref[...].astype(jnp.float32)              # (tile_rows, H)
    h = x.shape[-1]

    mu = jnp.mean(x, axis=-1, keepdims=True)        # XLU reduction
    diff = x - mu
    # torch.std default is the unbiased estimator (divide by N-1).
    var = jnp.sum(diff * diff, axis=-1, keepdims=True) * (1.0 / (h - 1))
    sigma = jnp.sqrt(var)
    # eps is added to the std (NOT inside the sqrt) — matches the torch module.
    # The per-row reciprocal runs on the EUP slot (free relative to the VPU).
    inv = pl.reciprocal(sigma + eps, approx=True)   # (tile_rows, 1)
    # Fold inv into gamma: scale is one broadcast multiply, then the hot
    # per-element path is a single fused multiply-add on the VPU.
    scale = inv * g                                 # (tile_rows, H)
    o_ref[...] = (diff * scale + b).astype(o_ref.dtype)


def _choose_tile_rows(rows, hidden, itemsize):
    """Largest multiple-of-8 row tile that fits the VMEM budget (capped)."""
    if rows <= 8:
        # Full extent satisfies the sublane constraint; no remainder handling.
        return rows
    # Double-buffered input + output tiles plus ~2 f32 temporaries per row.
    per_row_bytes = hidden * (4 * itemsize + 2 * 4)
    tr = _TILE_BUDGET_BYTES // max(per_row_bytes, 1)
    tr = max(8, min(int(tr), _MAX_TILE_ROWS, (rows // 8) * 8))
    return (tr // 8) * 8


def layer_norm(z, gamma, beta, eps=1e-08):
    """Pallas LayerNorm matching the custom PyTorch module's forward.

    z:     (..., H)  — at least 2D; normalization over the last axis; H > 1.
    gamma: (H,)      — self.sigma in the torch module.
    beta:  (H,)      — self.mu in the torch module.
    """
    # Mirror the module's `if z.size(1) == 1: return z` (static shape check).
    # Note: it inspects axis 1, which for 2-D inputs is the hidden dim — this
    # faithfully reproduces the (shape-convention fragile) torch behaviour.
    if z.shape[1] == 1:
        return z

    orig_shape = z.shape
    H = orig_shape[-1]
    assert H > 1, "hidden size must be > 1 (unbiased std divides by H - 1)"

    rows = 1
    for d in orig_shape[:-1]:
        rows *= d
    x2d = z.reshape(rows, H)

    itemsize = jnp.dtype(z.dtype).itemsize
    tr = _choose_tile_rows(rows, H, itemsize)
    grid = (pl.cdiv(rows, tr),)

    g2d = gamma.reshape(1, H)
    b2d = beta.reshape(1, H)

    # TODO(synk): for H < 128 the lane axis is underfilled (masked vst); a
    # production path should pack 128 // H rows per lane row (segmented
    # reduction) or fall back to plain XLA — kept simple here since the kernel
    # is intended for lane-dense hidden sizes.
    out = pl.pallas_call(
        functools.partial(_layernorm_kernel, eps=eps),
        out_shape=jax.ShapeDtypeStruct((rows, H), z.dtype),
        grid_spec=pltpu.PrefetchScalarGridSpec(
            num_scalar_prefetch=0,
            grid=grid,
            in_specs=[
                pl.BlockSpec((tr, H), lambda i: (i, 0)),
                pl.BlockSpec((1, H), lambda i: (0, 0)),   # resident gamma
                pl.BlockSpec((1, H), lambda i: (0, 0)),   # resident beta
            ],
            out_specs=pl.BlockSpec((tr, H), lambda i: (i, 0)),
        ),
        compiler_params=pltpu.CompilerParams(
            dimension_semantics=("parallel",),   # shards rows across TCs on v7x
            vmem_limit_bytes=_VMEM_LIMIT_BYTES,
        ),
    )(x2d, g2d, b2d)

    return out.reshape(orig_shape)


if __name__ == "__main__":
    key = jax.random.PRNGKey(0)
    batch, seq, hidden = 2, 8, 32

    z = jax.random.normal(key, (batch, seq, hidden), dtype=jnp.float32)

    # Deterministic parameter init, exactly as the module's __init__:
    gamma = jnp.ones((hidden,), dtype=jnp.float32)   # self.sigma
    beta = jnp.zeros((hidden,), dtype=jnp.float32)   # self.mu

    out = layer_norm(z, gamma, beta, eps=1e-08)
    out = jax.block_until_ready(out)

    # Reference check in plain JAX (unbiased std + eps on std, as in the module).
    mu = jnp.mean(z, axis=-1, keepdims=True)
    sd = jnp.std(z, axis=-1, keepdims=True, ddof=1)
    ref = (z - mu) / (sd + 1e-08) * gamma + beta
    # Tolerance accounts for the EUP approximate reciprocal (a few ULP of
    # relative error); still tight enough to catch a biased-vs-unbiased std
    # mistake (~1.6e-2 relative at H=32).
    assert jnp.allclose(out, ref, atol=5e-3, rtol=5e-3), "mismatch vs reference"

    print("KERNEL_OK")
</pallas_src>

<mosaic_0001>
module attributes {stable_mosaic.version = 11 : i64} {
  func.func @_layernorm_kernel(%arg0: i32, %arg1: memref<16x32xf32, #tpu.memory_space<vmem>>, %arg2: memref<1x32xf32, #tpu.memory_space<vmem>>, %arg3: memref<1x32xf32, #tpu.memory_space<vmem>>, %arg4: memref<16x32xf32, #tpu.memory_space<vmem>>) attributes {dimension_semantics = [#tpu.dimension_semantics<parallel>], iteration_bounds = array<i64: 1>, scalar_prefetch = 0 : i64, scratch_operands = 0 : i64, tpu.core_type = #tpu.core_type<tc>, window_params = [{transform_indices = @transform_0, window_bounds = array<i64: 16, 32>}, {pipeline_mode = #tpu.pipeline_mode<synchronous>, transform_indices = @transform_1, window_bounds = array<i64: 1, 32>}, {pipeline_mode = #tpu.pipeline_mode<synchronous>, transform_indices = @transform_2, window_bounds = array<i64: 1, 32>}, {transform_indices = @transform_3, window_bounds = array<i64: 16, 32>}]} {
    %c0 = arith.constant 0 : index
    %c0_0 = arith.constant 0 : index
    %0 = vector.load %arg2[%c0, %c0_0] : memref<1x32xf32, #tpu.memory_space<vmem>>, vector<1x32xf32>
    %c0_1 = arith.constant 0 : index
    %c0_2 = arith.constant 0 : index
    %1 = vector.load %arg3[%c0_1, %c0_2] : memref<1x32xf32, #tpu.memory_space<vmem>>, vector<1x32xf32>
    %c0_3 = arith.constant 0 : index
    %c0_4 = arith.constant 0 : index
    %2 = vector.load %arg1[%c0_3, %c0_4] : memref<16x32xf32, #tpu.memory_space<vmem>>, vector<16x32xf32>
    %cst = arith.constant dense<0.000000e+00> : vector<16xf32>
    %3 = vector.multi_reduction <add>, %2, %cst [1] : vector<16x32xf32> to vector<16xf32>
    %4 = vector.shape_cast %3 : vector<16xf32> to vector<16x1xf32>
    %cst_5 = arith.constant 3.200000e+01 : f32
    %5 = vector.broadcast %cst_5 : f32 to vector<16x1xf32>
    %6 = arith.divf %4, %5 : vector<16x1xf32>
    %7 = vector.broadcast %6 : vector<16x1xf32> to vector<16x32xf32>
    %8 = arith.subf %2, %7 : vector<16x32xf32>
    %9 = arith.mulf %8, %8 : vector<16x32xf32>
    %cst_6 = arith.constant dense<0.000000e+00> : vector<16xf32>
    %10 = vector.multi_reduction <add>, %9, %cst_6 [1] : vector<16x32xf32> to vector<16xf32>
    %11 = vector.shape_cast %10 : vector<16xf32> to vector<16x1xf32>
    %cst_7 = arith.constant 0.0322580636 : f32
    %12 = vector.broadcast %cst_7 : f32 to vector<16x1xf32>
    %13 = arith.mulf %11, %12 : vector<16x1xf32>
    %14 = math.sqrt %13 : vector<16x1xf32>
    %cst_8 = arith.constant 9.99999993E-9 : f32
    %15 = vector.broadcast %cst_8 : f32 to vector<16x1xf32>
    %16 = arith.addf %14, %15 : vector<16x1xf32>
    %17 = tpu.reciprocal %16 {approx = true} : vector<16x1xf32> -> vector<16x1xf32>
    %18 = vector.broadcast %17 : vector<16x1xf32> to vector<16x32xf32>
    %19 = vector.broadcast %0 : vector<1x32xf32> to vector<16x32xf32>
    %20 = arith.mulf %18, %19 : vector<16x32xf32>
    %21 = arith.mulf %8, %20 : vector<16x32xf32>
    %22 = vector.broadcast %1 : vector<1x32xf32> to vector<16x32xf32>
    %23 = arith.addf %21, %22 : vector<16x32xf32>
    %c0_9 = arith.constant 0 : index
    %c0_10 = arith.constant 0 : index
    %24 = vector.load %arg4[%c0_9, %c0_10] : memref<16x32xf32, #tpu.memory_space<vmem>>, vector<16x32xf32>
    tpu.vector_store %arg4[%c0_9, %c0_10], %23 {strides = array<i32>} : memref<16x32xf32, #tpu.memory_space<vmem>>, vector<16x32xf32>,
    return
  }
  func.func @transform_0(%arg0: i32) -> (i32, i32) {
    %c0_i32 = arith.constant 0 : i32
    %c0_i32_0 = arith.constant 0 : i32
    return %arg0, %c0_i32 : i32, i32
  }
  func.func @transform_1(%arg0: i32) -> (i32, i32) {
    %c0_i32 = arith.constant 0 : i32
    %c0_i32_0 = arith.constant 0 : i32
    %c0_i32_1 = arith.constant 0 : i32
    return %c0_i32, %c0_i32_0 : i32, i32
  }
  func.func @transform_2(%arg0: i32) -> (i32, i32) {
    %c0_i32 = arith.constant 0 : i32
    %c0_i32_0 = arith.constant 0 : i32
    %c0_i32_1 = arith.constant 0 : i32
    return %c0_i32, %c0_i32_0 : i32, i32
  }
  func.func @transform_3(%arg0: i32) -> (i32, i32) {
    %c0_i32 = arith.constant 0 : i32
    %c0_i32_0 = arith.constant 0 : i32
    return %arg0, %c0_i32 : i32, i32
  }
}

</mosaic_0001>

<bundles_post_ra>
// kernel: tpu_custom_call.1
= control target key start
LH: loop header
LB: loop body
LE: loop exit
PB: predicated region body
PF: predicated region fallthrough
CT: control target
= control target key end

     0   :  { %8 = vsyncpa [#allocation3], 0  ;;  %s216_s0 = inlined_call_operand.hbm [shape: f32[16,32], index: 0, kind: input, shape index: {}]   ;;  %s217_s1 = inlined_call_operand.vmem [shape: f32[1,32], index: 1, kind: input, shape index: {}]   ;;  %s218_s2 = inlined_call_operand.vmem [shape: f32[1,32], index: 2, kind: input, shape index: {}]   ;;  %s219_s3 = inlined_call_operand.hbm [shape: f32[16,32], index: 3, kind: output, shape index: {}]  }
   0x1   :  { %9 = vsyncpa [#allocation4], 0  ;;  %s168_s12 = smov [#allocation2]  }
   0x2   :  { %s15_s13 = sshll.u32 %s168_s12, 4  ;;  %s16_s13 = int_to_ptr.vmem [resolvable:$true] %s15_s13 }
   0x3   :  { %s132_s14 = scalar_lea.vmem %s16_s13, 256  ;;  %p137_p1 = scmp.lt.s32.totalorder %s16_s13, %s16_s13 }
   0x4   :  { %p133_p0 = scmp.ne.s32.totalorder %s16_s13, %s132_s14  ;;  %p138_p2 = scmp.lt.s32.totalorder %s132_s14, %s132_s14 }
   0x6   :  { %p139_p3 = por %p138_p2, %p137_p1 }
   0x8   :  { %p140_p4 = pnand %p139_p3, %p133_p0 }
   0xa   :  { %143 = shalt.err (!%p140_p4)
}
   0xb   :  { %s169_s15 = smov 128   ;;  %s170_s16 = smov 8  }
   0xc   :  { %21 = dma.hbm_to_vmem [thread:$0]  %s216_s0, 256, %s16_s13, [#allocation3], %s169_s15, %s169_s15, %s170_s16  }
   0xd   :  { %164 = dma.done.wait [#allocation3], 256  }
   0xe   :  { %165 = vsyncadd [#allocation3], 4294967040  ;;  %vm33_vm0 = vcmask 261120   ;;  %v31_v0 = vld [vmem:[#allocation2] sm:$0xff]  ;;  %v32_v1 = vld [vmem:[#allocation2 + $0x8] sm:$0xff]  ;;  %s171_s22 = smov [#allocation5]  }
   0xf   :  { %v34_v2 = vsel %vm33_vm0, %v31_v0, 0.0  ;;  %v37_v3 = vsel %vm33_vm0, %v32_v1, 0.0  ;;  %v110_v30 = vld [vmem:[%s217_s1] ss:$0 sm:$0xff]  ;;  %s98_s23 = sshll.u32 %s171_s22, 4  ;;  %s99_s23 = int_to_ptr.vmem [resolvable:$true] %s98_s23 }
  0x10   :  { %35 = vadd.xlane.f32.xlu0 %v34_v2  ;;  %v111_v33 = vld [vmem:[%s218_s2] ss:$0 sm:$0xff]  ;;  %s144_s1 = scalar_lea.vmem %s99_s23, 256  ;;  %p149_p6 = scmp.lt.s32.totalorder %s99_s23, %s99_s23 }
  0x11   :  { %p145_p5 = scmp.ne.s32.totalorder %s99_s23, %s144_s1  ;;  %p150_p7 = scmp.lt.s32.totalorder %s144_s1, %s144_s1 }
  0x13   :  { %p151_p8 = por %p150_p7, %p149_p6 }
  0x14   :  { %38 = vadd.xlane.f32.xlu0 %v37_v3 }
  0x15   :  { %p152_p9 = pnand %p151_p8, %p145_p5 }
  0x99   :  { %v36_v4 = vpop.xlane.xlu0 %35 }
  0x9a   :  { %v41_v5 = vmul.f32 0.03125, %v36_v4 }
  0x9c   :  { %v43_v6 = vsub.f32 %v31_v0, %v41_v5 }
  0x9d   :  { %v39_v7 = vpop.xlane.xlu0 %38 }
  0x9e   :  { %v42_v8 = vmul.f32 0.03125, %v39_v7  ;;  %v45_v9 = vmul.f32 %v43_v6, %v43_v6 }
  0xa0   :  { %v44_v10 = vsub.f32 %v32_v1, %v42_v8  ;;  %v47_v11 = vsel %vm33_vm0, %v45_v9, 0.0 }
  0xa1   :  { %48 = vadd.xlane.f32.xlu1 %v47_v11 }
  0xa2   :  { %v46_v12 = vmul.f32 %v44_v10, %v44_v10 }
  0xa4   :  { %v50_v13 = vsel %vm33_vm0, %v46_v12, 0.0 }
  0xa5   :  { %51 = vadd.xlane.f32.xlu1 %v50_v13 }
 0x12a   :  { %v49_v14 = vpop.xlane.xlu1 %48 }
 0x12b   :  { %v53_v15 = vmul.f32 0.032258064, %v49_v14 }
 0x12d   :  { %116 = vrsqrt.f32 %v53_v15  ;;  %vm57_vm1 = vcmp.eq.f32.partialorder %v53_v15, inf  ;;  %v60_v20 = vand.u32 2147483648, %v53_v15  ;;  %vm59_vm2 = vcmp.eq.f32.partialorder %v53_v15, 0.0 }
 0x12e   :  { %v52_v16 = vpop.xlane.xlu1 %51 }
 0x12f   :  { %v54_v17 = vmul.f32 0.032258064, %v52_v16 }
 0x131   :  { %118 = vrsqrt.f32 %v54_v17  ;;  %vm64_vm3 = vcmp.eq.f32.partialorder %v54_v17, inf  ;;  %v67_v26 = vand.u32 2147483648, %v54_v17  ;;  %vm66_vm4 = vcmp.eq.f32.partialorder %v54_v17, 0.0 }
 0x13a   :  { %v117_v18 = vpop.eup %116 }
 0x13b   :  { %v56_v19 = vmul.f32 %v117_v18, %v53_v15 }
 0x13d   :  { %v58_v21 = vsel %vm57_vm1, %v53_v15, %v56_v19 }
 0x13e   :  { %v119_v22 = vpop.eup %118  ;;  %v61_v23 = vsel %vm59_vm2, %v60_v20, %v58_v21 }
 0x13f   :  { %v69_v24 = vadd.f32 1e-08, %v61_v23  ;;  %v63_v25 = vmul.f32 %v119_v22, %v54_v17 }
 0x141   :  { %120 = vrcp.f32 %v69_v24  ;;  %v65_v27 = vsel %vm64_vm3, %v54_v17, %v63_v25 }
 0x142   :  { %v68_v28 = vsel %vm66_vm4, %v67_v26, %v65_v27 }
 0x143   :  { %v70_v29 = vadd.f32 1e-08, %v68_v28 }
 0x145   :  { %122 = vrcp.f32 %v70_v29 }
 0x14e   :  { %v121_v31 = vpop.eup %120 }
 0x14f   :  { %v79_v32 = vmul.f32 %v121_v31, %v110_v30 }
 0x151   :  { %v81_v34 = vmul.f32 %v79_v32, %v43_v6 }
 0x152   :  { %v123_v35 = vpop.eup %122 }
 0x153   :  { %v80_v36 = vmul.f32 %v123_v35, %v110_v30  ;;  %v89_v37 = vadd.f32 %v111_v33, %v81_v34 }
 0x155   :  { %v82_v38 = vmul.f32 %v80_v36, %v44_v10  ;;  %91 = vst.msk [vmem:[#allocation5] sm:$0xff] %vm33_vm0, %v89_v37 }
 0x157   :  { %v90_v39 = vadd.f32 %v111_v33, %v82_v38 }
 0x159   :  { %92 = vst.msk [vmem:[#allocation5 + $0x8] sm:$0xff] %vm33_vm0, %v90_v39 }
 0x15a   :  { %155 = shalt.err (!%p152_p9)
}
 0x15b   :  { %104 = dma.vmem_to_hbm [thread:$0]  %s99_s23, 256, %s219_s3, [#allocation4], %s169_s15, %s169_s15, %s170_s16  }
 0x15c   :  { %166 = dma.done.wait [#allocation4], 256  }
 0x15d   :  { %167 = vsyncadd [#allocation4], 4294967040 }
 0x15e   :  { %108 = vsyncpa [#allocation3], 1 }
 0x15f   :  { %109 = vsyncpa [#allocation4], 1 }

</bundles_post_ra>
